<compile_context>
chip_gen: v7x
topology: tpu7x:2x2x1
jax: 0.10.0
libtpu: 0.0.40
codegen_flags: <defaults>
</compile_context>

<pallas_src>
import functools

import jax
import jax.numpy as jnp
from jax.experimental import pallas as pl
from jax.experimental.pallas import tpu as pltpu


def _dot_kernel(uid_ref, gid_ref, ut_ref, gt_ref, out_ref):
    """One grid step == one tile of TB samples.

    uid_ref / gid_ref : (1, 1, TB) int32  — user / game ids for this tile (VMEM)
    ut_ref            : (D, n_users) f32  — transposed user table, VMEM-resident
    gt_ref            : (D, n_games) f32  — transposed game table, VMEM-resident
    out_ref           : (1, 1, TB) f32    — per-sample dot products (lane-dense)
    """
    uids = uid_ref[0]                     # (1, TB) int32
    gids = gid_ref[0]                     # (1, TB) int32
    tb = uids.shape[-1]
    n_users = ut_ref.shape[-1]
    n_games = gt_ref.shape[-1]

    # Vectorized row gather over the whole tile via exact one-hot selection.
    u_iota = jax.lax.broadcasted_iota(jnp.int32, (n_users, tb), 0)
    g_iota = jax.lax.broadcasted_iota(jnp.int32, (n_games, tb), 0)
    oh_u = (u_iota == uids).astype(jnp.float32)      # (n_users, TB)
    oh_g = (g_iota == gids).astype(jnp.float32)      # (n_games, TB)

    # Exact selection: each one-hot column has a single 1, HIGHEST keeps f32 exact.
    users_t = jnp.dot(ut_ref[...], oh_u,
                      preferred_element_type=jnp.float32,
                      precision=jax.lax.Precision.HIGHEST)   # (D, TB)
    games_t = jnp.dot(gt_ref[...], oh_g,
                      preferred_element_type=jnp.float32,
                      precision=jax.lax.Precision.HIGHEST)   # (D, TB)

    # (users * games).sum over the embedding dim -> lane-dense (1, TB) tile.
    out_ref[0] = jnp.sum(users_t * games_t, axis=0, keepdims=True)


@functools.partial(jax.jit, static_argnames=("tile",))
def game_recs_forward(samples, user_emb, game_emb, *, tile=512):
    """Pallas equivalent of GameRecs.forward.

    samples:  (B, 2) int32 — column 0 = user ids, column 1 = game ids.
    user_emb: (n_users, emb_dim) float32
    game_emb: (n_games, emb_dim) float32
    returns:  (B,) float32  == (user_emb[u] * game_emb[g]).sum(-1)
    """
    B = samples.shape[0]
    n_users, emb_dim = user_emb.shape
    n_games = game_emb.shape[0]

    # Samples per grid step: a multiple of 128 (lane-dense), capped at `tile`.
    tb = min(tile, ((B + 127) // 128) * 128)
    b_pad = ((B + tb - 1) // tb) * tb
    nt = b_pad // tb

    uid = samples[:, 0].astype(jnp.int32)
    gid = samples[:, 1].astype(jnp.int32)
    if b_pad != B:
        pad = b_pad - B
        uid = jnp.concatenate([uid, jnp.zeros((pad,), jnp.int32)])
        gid = jnp.concatenate([gid, jnp.zeros((pad,), jnp.int32)])
    uid = uid.reshape(nt, 1, tb)
    gid = gid.reshape(nt, 1, tb)

    # Transposed tables: (D, n_rows). Full-extent blocks, constant index_map
    # -> fetched once, resident in VMEM for the whole grid.
    ut = user_emb.T
    gt = game_emb.T

    grid_spec = pltpu.PrefetchScalarGridSpec(
        num_scalar_prefetch=0,
        grid=(nt,),
        in_specs=[
            pl.BlockSpec((1, 1, tb), lambda i: (i, 0, 0)),        # user id tile
            pl.BlockSpec((1, 1, tb), lambda i: (i, 0, 0)),        # game id tile
            pl.BlockSpec((emb_dim, n_users), lambda i: (0, 0)),   # resident user table
            pl.BlockSpec((emb_dim, n_games), lambda i: (0, 0)),   # resident game table
        ],
        out_specs=pl.BlockSpec((1, 1, tb), lambda i: (i, 0, 0)),
    )

    out = pl.pallas_call(
        _dot_kernel,
        out_shape=jax.ShapeDtypeStruct((nt, 1, tb), jnp.float32),
        grid_spec=grid_spec,
        compiler_params=pltpu.CompilerParams(
            dimension_semantics=("parallel",),       # independent sample tiles
            vmem_limit_bytes=32 * 1024 * 1024,       # explicit budget (v5e default is 16 MiB)
        ),
    )(uid, gid, ut, gt)

    return out.reshape(-1)[:B]


def xavier_uniform(key, shape):
    # matches nn.init.xavier_uniform_ for a 2-D weight: U(-a, a), a = sqrt(6/(fan_in+fan_out))
    fan_in, fan_out = shape
    bound = (6.0 / (fan_in + fan_out)) ** 0.5
    return jax.random.uniform(key, shape, jnp.float32, -bound, bound)


if __name__ == "__main__":
    n_users, n_games, emb_dim = 16, 24, 128

    key = jax.random.PRNGKey(0)
    k_u, k_g = jax.random.split(key, 2)
    user_emb = xavier_uniform(k_u, (n_users, emb_dim))
    game_emb = xavier_uniform(k_g, (n_games, emb_dim))

    ok = True
    for batch, tile in ((8, 128), (300, 128), (300, 512)):
        # covers: single padded tile, multi-tile grid, and a single larger tile
        ks1, ks2 = jax.random.split(jax.random.fold_in(key, batch * 1000 + tile))
        samples = jnp.stack(
            [jax.random.randint(ks1, (batch,), 0, n_users, dtype=jnp.int32),
             jax.random.randint(ks2, (batch,), 0, n_games, dtype=jnp.int32)],
            axis=1)

        out = jax.block_until_ready(
            game_recs_forward(samples, user_emb, game_emb, tile=tile))

        # pure-JAX reference of the PyTorch forward
        ref = jnp.sum(user_emb[samples[:, 0]] * game_emb[samples[:, 1]], axis=1)
        ok &= out.shape == (batch,)
        ok &= out.dtype == jnp.float32
        ok &= bool(jnp.allclose(out, ref, atol=1e-4, rtol=1e-4))

    assert ok
    print("KERNEL_OK")
</pallas_src>

<mosaic_0001>
module attributes {stable_mosaic.version = 11 : i64} {
  func.func @_dot_kernel(%arg0: i32, %arg1: memref<1x1x128xi32, #tpu.memory_space<vmem>>, %arg2: memref<1x1x128xi32, #tpu.memory_space<vmem>>, %arg3: memref<128x16xf32, #tpu.memory_space<vmem>>, %arg4: memref<128x24xf32, #tpu.memory_space<vmem>>, %arg5: memref<1x1x128xf32, #tpu.memory_space<vmem>>) attributes {dimension_semantics = [#tpu.dimension_semantics<parallel>], iteration_bounds = array<i64: 1>, scalar_prefetch = 0 : i64, scratch_operands = 0 : i64, tpu.core_type = #tpu.core_type<tc>, window_params = [{transform_indices = @transform_0, window_bounds = array<i64: 1, 1, 128>}, {transform_indices = @transform_1, window_bounds = array<i64: 1, 1, 128>}, {pipeline_mode = #tpu.pipeline_mode<synchronous>, transform_indices = @transform_2, window_bounds = array<i64: 128, 16>}, {pipeline_mode = #tpu.pipeline_mode<synchronous>, transform_indices = @transform_3, window_bounds = array<i64: 128, 24>}, {transform_indices = @transform_4, window_bounds = array<i64: 1, 1, 128>}]} {
    %c0 = arith.constant 0 : index
    %c0_0 = arith.constant 0 : index
    %c0_1 = arith.constant 0 : index
    %0 = vector.load %arg1[%c0, %c0_0, %c0_1] : memref<1x1x128xi32, #tpu.memory_space<vmem>>, vector<1x1x128xi32>
    %1 = vector.shape_cast %0 : vector<1x1x128xi32> to vector<1x128xi32>
    %c0_2 = arith.constant 0 : index
    %c0_3 = arith.constant 0 : index
    %c0_4 = arith.constant 0 : index
    %2 = vector.load %arg2[%c0_2, %c0_3, %c0_4] : memref<1x1x128xi32, #tpu.memory_space<vmem>>, vector<1x1x128xi32>
    %3 = vector.shape_cast %2 : vector<1x1x128xi32> to vector<1x128xi32>
    %4 = tpu.iota {dimensions = array<i32: 0>} : vector<16x128xi32>
    %5 = tpu.iota {dimensions = array<i32: 0>} : vector<24x128xi32>
    %6 = vector.broadcast %1 : vector<1x128xi32> to vector<16x128xi32>
    %7 = arith.cmpi eq, %4, %6 : vector<16x128xi32>
    %8 = arith.extui %7 : vector<16x128xi1> to vector<16x128xi32>
    %9 = arith.sitofp %8 : vector<16x128xi32> to vector<16x128xf32>
    %10 = vector.broadcast %3 : vector<1x128xi32> to vector<24x128xi32>
    %11 = arith.cmpi eq, %5, %10 : vector<24x128xi32>
    %12 = arith.extui %11 : vector<24x128xi1> to vector<24x128xi32>
    %13 = arith.sitofp %12 : vector<24x128xi32> to vector<24x128xf32>
    %c0_5 = arith.constant 0 : index
    %c0_6 = arith.constant 0 : index
    %14 = vector.load %arg3[%c0_5, %c0_6] : memref<128x16xf32, #tpu.memory_space<vmem>>, vector<128x16xf32>
    %cst = arith.constant dense<0.000000e+00> : vector<128x128xf32>
    %15 = tpu.matmul %14, %9, %cst {dimension_numbers = #tpu.dot_dimension_numbers<[1], [0], [0], [1], [0, 0, 1, 1], [], []>, precision = #tpu.contract_precision<fp32>} : vector<128x16xf32>, vector<16x128xf32>, vector<128x128xf32> -> vector<128x128xf32>
    %c0_7 = arith.constant 0 : index
    %c0_8 = arith.constant 0 : index
    %16 = vector.load %arg4[%c0_7, %c0_8] : memref<128x24xf32, #tpu.memory_space<vmem>>, vector<128x24xf32>
    %cst_9 = arith.constant dense<0.000000e+00> : vector<128x128xf32>
    %17 = tpu.matmul %16, %13, %cst_9 {dimension_numbers = #tpu.dot_dimension_numbers<[1], [0], [0], [1], [0, 0, 1, 1], [], []>, precision = #tpu.contract_precision<fp32>} : vector<128x24xf32>, vector<24x128xf32>, vector<128x128xf32> -> vector<128x128xf32>
    %18 = arith.mulf %15, %17 : vector<128x128xf32>
    %cst_10 = arith.constant dense<0.000000e+00> : vector<128xf32>
    %19 = vector.multi_reduction <add>, %18, %cst_10 [0] : vector<128x128xf32> to vector<128xf32>
    %20 = vector.shape_cast %19 : vector<128xf32> to vector<1x128xf32>
    %c0_11 = arith.constant 0 : index
    %c0_12 = arith.constant 0 : index
    %c0_13 = arith.constant 0 : index
    %21 = vector.load %arg5[%c0_11, %c0_12, %c0_13] : memref<1x1x128xf32, #tpu.memory_space<vmem>>, vector<1x1x128xf32>
    %22 = vector.shape_cast %21 : vector<1x1x128xf32> to vector<1x128xf32>
    %23 = vector.shape_cast %20 : vector<1x128xf32> to vector<1x1x128xf32>
    tpu.vector_store %arg5[%c0_11, %c0_12, %c0_13], %23 {strides = array<i32>} : memref<1x1x128xf32, #tpu.memory_space<vmem>>, vector<1x1x128xf32>,
    return
  }
  func.func @transform_0(%arg0: i32) -> (i32, i32, i32) {
    %c0_i32 = arith.constant 0 : i32
    %c0_i32_0 = arith.constant 0 : i32
    %c0_i32_1 = arith.constant 0 : i32
    return %arg0, %c0_i32, %c0_i32_0 : i32, i32, i32
  }
  func.func @transform_1(%arg0: i32) -> (i32, i32, i32) {
    %c0_i32 = arith.constant 0 : i32
    %c0_i32_0 = arith.constant 0 : i32
    %c0_i32_1 = arith.constant 0 : i32
    return %arg0, %c0_i32, %c0_i32_0 : i32, i32, i32
  }
  func.func @transform_2(%arg0: i32) -> (i32, i32) {
    %c0_i32 = arith.constant 0 : i32
    %c0_i32_0 = arith.constant 0 : i32
    %c0_i32_1 = arith.constant 0 : i32
    return %c0_i32, %c0_i32_0 : i32, i32
  }
  func.func @transform_3(%arg0: i32) -> (i32, i32) {
    %c0_i32 = arith.constant 0 : i32
    %c0_i32_0 = arith.constant 0 : i32
    %c0_i32_1 = arith.constant 0 : i32
    return %c0_i32, %c0_i32_0 : i32, i32
  }
  func.func @transform_4(%arg0: i32) -> (i32, i32, i32) {
    %c0_i32 = arith.constant 0 : i32
    %c0_i32_0 = arith.constant 0 : i32
    %c0_i32_1 = arith.constant 0 : i32
    return %arg0, %c0_i32, %c0_i32_0 : i32, i32, i32
  }
}

</mosaic_0001>

<bundles_post_ra>
// kernel: game_recs_forward.1
= control target key start
LH: loop header
LB: loop body
LE: loop exit
PB: predicated region body
PF: predicated region fallthrough
CT: control target
= control target key end

     0   :  { %v19_v0 = vlaneseq  ;;  %vm62_vm0 = vcmask 130048   ;;  %vm1231_vm1 = vcmask 195584   ;;  %v4049_v15 = vmov 0.0   ;;  %s4019_s1 = inlined_call_operand.vmem [shape: s32[1,1,128], index: 1, kind: input, shape index: {}]   ;;  %s4020_s0 = inlined_call_operand.vmem [shape: s32[1,1,128], index: 0, kind: input, shape index: {}]   ;;  %s4021_s2 = inlined_call_operand.vmem [shape: f32[128,16], index: 2, kind: input, shape index: {}]   ;;  %s4022_s3 = inlined_call_operand.vmem [shape: f32[128,24], index: 3, kind: input, shape index: {}]   ;;  %s4023_s4 = inlined_call_operand.vmem [shape: f32[1,1,128], index: 4, kind: output, shape index: {}]  }
   0x1   :  { %v2442_v1 = vld [vmem:[%s4019_s1] ss:$0 sm:$0xff]  ;;  %v47_v7 = vld [vmem:[%s4021_s2 + $0x8] sm:$0xff]  ;;  %v48_v22 = vld [vmem:[%s4021_s2 + $0x10] sm:$0xff]  ;;  %v4136_v27 = vmov 0  ;;  %v4038_v40 = vmov 1.0  }
   0x2   :  { %v2439_v2 = vld [vmem:[%s4020_s0] ss:$0 sm:$0xff]  ;;  %v20_v4 = vshrl.u32 %v19_v0, 7  ;;  %v1216_v8 = vld [vmem:[%s4022_s3 + $0x8] sm:$0xff]  ;;  %v67_v11 = vsel %vm62_vm0, %v47_v7, 0  ;;  %v1217_v23 = vld [vmem:[%s4022_s3 + $0x10] sm:$0xff] }
   0x3   :  { %v46_v3 = vld [vmem:[%s4021_s2] sm:$0xff]  ;;  %v1236_v12 = vsel %vm1231_vm1, %v1216_v8, 0  ;;  %v4040_v29 = vmov 1.0|1.0   ;;  %v3340_v34 = vand.u32 4294901760, %v67_v11  ;;  %v49_v35 = vld [vmem:[%s4021_s2 + $0x18] sm:$0xff] }
   0x4   :  { %v64_v5 = vsel %vm62_vm0, %v46_v3, 0  ;;  %v1215_v6 = vld [vmem:[%s4022_s3] sm:$0xff]  ;;  %v21_v13 = vadd.s32 8, %v20_v4  ;;  %vm37_vm2 = vcmp.eq.s32.totalorder %v20_v4, %v2442_v1  ;;  %vm27_vm3 = vcmp.eq.s32.totalorder %v20_v4, %v2439_v2  ;;  %v1218_v57 = vld [vmem:[%s4022_s3 + $0x18] sm:$0xff] }
   0x5   :  { %v3289_v9 = vand.u32 4294901760, %v64_v5  ;;  %v1233_v10 = vsel %vm1231_vm1, %v1215_v6, 0  ;;  %v22_v14 = vadd.s32 16, %v20_v4  ;;  %v2443_v16 = vsel %vm37_vm2, 1.0, %v4049_v15  ;;  %v50_v6 = vld [vmem:[%s4021_s2 + $0x20] sm:$0xff] }
   0x6   :  { %v2440_v17 = vsel %vm27_vm3, 1.0, %v4049_v15  ;;  %v3301_v19 = vand.u32 4294901760, %v1233_v10  ;;  %vm38_vm4 = vcmp.eq.s32.totalorder %v21_v13, %v2442_v1  ;;  %v3303_v20 = vsub.f32 %v2443_v16, %v2443_v16 }
   0x7   :  { %v3299_v18 = vsub.f32 %v64_v5, %v3289_v9  ;;  %vm28_vm5 = vcmp.eq.s32.totalorder %v21_v13, %v2439_v2  ;;  %v3305_v21 = vsub.f32 %v2440_v17, %v2440_v17  ;;  %v2444_v24 = vsel %vm38_vm4, 1.0, %v4049_v15  ;;  %vm3315_vm6 = vmpackc.low %vm38_vm4, %vm37_vm2 }
   0x8   :  { %v2441_v26 = vsel %vm28_vm5, 1.0, %v4049_v15  ;;  %vm3320_vm7 = vcmp.eq.s32.totalorder %v22_v14, %v2442_v1  ;;  %3056 = vmatprep.subr.msk.bf16.mxu1 %vm3315_vm6, %v4040_v29  ;;  %v3328_v30 = vsub.f32 %v2444_v24, %v2444_v24  ;;  %vm3331_vm8 = vmpackc.low %vm28_vm5, %vm27_vm3  ;;  %v3338_v33 = vsub.f32 %v1233_v10, %v3301_v19 }
   0x9   :  { %v4137_v27 = vsel %vm3320_vm7, 4294967295, %v4136_v27  ;;  %v4037_v28 = vand.u32 4294901760, %v3299_v18  ;;  %v3335_v32 = vsub.f32 %v2441_v26, %v2441_v26  ;;  %3058 = vmatpush3.bf16.msk.msra.mxu1 %vm3315_vm6, %v4040_v29  ;;  %3032 = vmatprep.subr.msk.bf16.mxu0 %vm3331_vm8, %v4040_v29  ;;  %v3354_v37 = vand.u32 4294901760, %v1236_v12 }
   0xa   :  { %4138 = vst [vmem:[#allocation2_spill] sm:$0xff] %v4137_v27  ;;  %v70_v38 = vsel %vm62_vm0, %v48_v22, 0  ;;  %v1239_v39 = vsel %vm1231_vm1, %v1217_v23, 0  ;;  %3034 = vmatpush3.bf16.msk.msra.mxu0 %vm3331_vm8, %v4040_v29  ;;  %2855 = vmatprep.subr.msk.mxu1 %vm3320_vm7, %v4038_v40  ;;  %v4035_v41 = vand.u32 4294901760, %v3338_v33  ;;  %v3366_v42 = vsub.f32 %v67_v11, %v3340_v34  ;;  %v51_v22 = vld [vmem:[%s4021_s2 + $0x28] sm:$0xff] }
   0xb   :  { %v181_v36 = vsub.f32 %v3299_v18, %v4037_v28  ;;  %v3368_v43 = vand.u32 4294901760, %v70_v38  ;;  %v3370_v44 = vand.u32 4294901760, %v1239_v39  ;;  %v3373_v46 = vsub.f32 %v1236_v12, %v3354_v37  ;;  %v1219_v12 = vld [vmem:[%s4022_s3 + $0x20] sm:$0xff] }
   0xc   :  { %v73_v47 = vsel %vm62_vm0, %v49_v35, 0  ;;  %v4047_v48 = vand.u32 4294901760, %v3305_v21  ;;  %v1351_v49 = vsub.f32 %v3338_v33, %v4035_v41  ;;  %v4034_v50 = vand.u32 4294901760, %v3366_v42 }
   0xd   :  { %v182_v45 = vand.u32 4294901760, %v181_v36  ;;  %v3382_v51 = vsub.f32 %v70_v38, %v3368_v43  ;;  %v3385_v52 = vsub.f32 %v1239_v39, %v3370_v44  ;;  %2856 = vmatpush3.msk.msra.mxu1 %vm3320_vm7, %v4038_v40  ;;  %v4031_v53 = vand.u32 4294901760, %v3373_v46 }
   0xe   :  { %v3391_v54 = vand.u32 4294901760, %v73_v47  ;;  %v342_v55 = vsub.f32 %v3305_v21, %v4047_v48  ;;  %v4046_v56 = vand.u32 4294901760, %v3335_v32  ;;  %v1352_v58 = vand.u32 4294901760, %v1351_v49  ;;  %v52_v49 = vld [vmem:[%s4021_s2 + $0x30] sm:$0xff] }
   0xf   :  { %2687 = vmatprep.mubr.f32.mxu0 %v182_v45  ;;  %v191_v59 = vsub.f32 %v3366_v42, %v4034_v50  ;;  %v4030_v60 = vand.u32 4294901760, %v3382_v51  ;;  %v4029_v61 = vand.u32 4294901760, %v3385_v52  ;;  %v1361_v62 = vsub.f32 %v3373_v46, %v4031_v53 }
  0x10   :  { %v3409_v63 = vsub.f32 %v73_v47, %v3391_v54  ;;  %v343_v0 = vand.u32 4294901760, %v342_v55  ;;  %v349_v1 = vsub.f32 %v3335_v32, %v4046_v56  ;;  %2857 = vmatprep.mubr.f32.mxu1 %v1352_v58  ;;  %v1242_v5 = vsel %vm1231_vm1, %v1218_v57, 0  ;;  %v1220_v47 = vld [vmem:[%s4022_s3 + $0x28] sm:$0xff] }
  0x11   :  { %v192_v2 = vand.u32 4294901760, %v191_v59  ;;  %v201_v3 = vsub.f32 %v3382_v51, %v4030_v60  ;;  %v1371_v4 = vsub.f32 %v3385_v52, %v4029_v61  ;;  %v1362_v7 = vand.u32 4294901760, %v1361_v62 }
  0x12   :  { %v4028_v8 = vand.u32 4294901760, %v3409_v63  ;;  %v350_v10 = vand.u32 4294901760, %v349_v1  ;;  %v3425_v11 = vand.u32 4294901760, %v1242_v5  ;;  %v4045_v16 = vand.u32 4294901760, %v3303_v20 }
  0x13   :  { %2688 = vmatmul.mubr.f32.vlgmr.msra.gmra.mrb[0].mxu0 %v192_v2  ;;  %v202_v13 = vand.u32 4294901760, %v201_v3  ;;  %v1372_v14 = vand.u32 4294901760, %v1371_v4  ;;  %v4044_v17 = vand.u32 4294901760, %v3328_v30  ;;  %2858 = vmatmul.mubr.f32.vlgmr.msra.gmra.mrb[0].mxu1 %v1362_v7  ;;  %v76_v35 = vsel %vm62_vm0, %v50_v6, 0  ;;  %v1221_v3 = vld [vmem:[%s4022_s3 + $0x30] sm:$0xff] }
  0x14   :  { %v211_v23 = vsub.f32 %v3409_v63, %v4028_v8  ;;  %v3035_v24 = vpack.c.bf16 %v350_v10, %v343_v0  ;;  %v3439_v26 = vsub.f32 %v1242_v5, %v3425_v11  ;;  %v1512_v36 = vsub.f32 %v3303_v20, %v4045_v16 }
  0x15   :  { %2690 = vmatprep.mubr.f32.mxu0 %v202_v13  ;;  %2860 = vmatprep.mubr.f32.mxu1 %v1372_v14  ;;  %v1519_v38 = vsub.f32 %v3328_v30, %v4044_v17  ;;  %v3448_v39 = vand.u32 4294901760, %v76_v35  ;;  %v1245_v45 = vsel %vm1231_vm1, %v1219_v12, 0  ;;  %v79_v59 = vsel %vm62_vm0, %v51_v22, 0  ;;  %v53_v22 = vld [vmem:[%s4021_s2 + $0x38] sm:$0xff] }
  0x16   :  { %4141 = vst [vmem:[#allocation3_spill] sm:$0xff] %v3439_v26  ;;  %v212_v55 = vand.u32 4294901760, %v211_v23  ;;  %3036 = vmatprep.subr.bf16.mxu0 %v3035_v24  ;;  %v4026_v57 = vand.u32 4294901760, %v3439_v26  ;;  %v3458_v58 = vand.u32 4294901760, %v1245_v45  ;;  %v1513_v62 = vand.u32 4294901760, %v1512_v36  ;;  %v1222_v23 = vld [vmem:[%s4022_s3 + $0x38] sm:$0xff] }
  0x17   :  { %v1520_v0 = vand.u32 4294901760, %v1519_v38  ;;  %3038 = vmatpush3.bf16.msra.mxu0 %v3035_v24  ;;  %v3462_v1 = vsub.f32 %v76_v35, %v3448_v39  ;;  %v3464_v2 = vand.u32 4294901760, %v79_v59  ;;  %v1248_v6 = vsel %vm1231_vm1, %v1220_v47, 0 }
  0x18   :  { %2691 = vmatmul.mubr.f32.gmra.mrb[2].mxu0 %v212_v55  ;;  %v1381_v4 = vsub.f32 %v3439_v26, %v4026_v57  ;;  %v3473_v5 = vsub.f32 %v1245_v45, %v3458_v58  ;;  %v82_v7 = vsel %vm62_vm0, %v52_v49, 0  ;;  %v3481_v14 = vand.u32 4294901760, %v1248_v6 }
  0x19   :  { %4142 = vst [vmem:[#allocation4_spill] sm:$0xff] %v3462_v1  ;;  %v3059_v10 = vpack.c.bf16 %v1520_v0, %v1513_v62  ;;  %v4024_v12 = vand.u32 4294901760, %v3462_v1  ;;  %v3479_v13 = vsub.f32 %v79_v59, %v3464_v2  ;;  %v3490_v36 = vand.u32 4294901760, %v82_v7 }
  0x1a   :  { %4143 = vst [vmem:[#allocation5_spill] sm:$0xff] %v3473_v5  ;;  %v1382_v24 = vand.u32 4294901760, %v1381_v4  ;;  %v4025_v35 = vand.u32 4294901760, %v3473_v5  ;;  %v1251_v38 = vsel %vm1231_vm1, %v1221_v3, 0  ;;  %v3498_v49 = vsub.f32 %v1248_v6, %v3481_v14  ;;  %v54_v4 = vld [vmem:[%s4021_s2 + $0x40] sm:$0xff] }
  0x1b   :  { %4144 = vst [vmem:[#allocation6_spill] sm:$0xff] %v3479_v13  ;;  %3060 = vmatprep.subr.bf16.mxu1 %v3059_v10  ;;  %v221_v45 = vsub.f32 %v3462_v1, %v4024_v12  ;;  %v4027_v47 = vand.u32 4294901760, %v3479_v13  ;;  %v3500_v55 = vand.u32 4294901760, %v1251_v38  ;;  %v3506_v62 = vsub.f32 %v82_v7, %v3490_v36 }
  0x1c   :  { %4145 = vst [vmem:[#allocation7_spill] sm:$0xff] %v3498_v49  ;;  %2861 = vmatmul.mubr.f32.gmra.mrb[2].mxu1 %v1382_v24  ;;  %v1391_v59 = vsub.f32 %v3473_v5, %v4025_v35  ;;  %v85_v0 = vsel %vm62_vm0, %v53_v22, 0  ;;  %v1254_v3 = vsel %vm1231_vm1, %v1222_v23, 0  ;;  %v4032_v12 = vand.u32 4294901760, %v3498_v49 }
  0x1d   :  { %4146 = vst [vmem:[#allocation8_spill] sm:$0xff] %v3506_v62  ;;  %3062 = vmatpush3.bf16.msra.mxu1 %v3059_v10  ;;  %v222_v6 = vand.u32 4294901760, %v221_v45  ;;  %v231_v24 = vsub.f32 %v3479_v13, %v4027_v47  ;;  %v3518_v35 = vsub.f32 %v1251_v38, %v3500_v55  ;;  %v4033_v22 = vand.u32 4294901760, %v3506_v62  ;;  %v1223_v10 = vld [vmem:[%s4022_s3 + $0x40] sm:$0xff]  ;;  %v55_v45 = vld [vmem:[%s4021_s2 + $0x48] sm:$0xff] }
  0x1e   :  { %v1392_v7 = vand.u32 4294901760, %v1391_v59  ;;  %v3521_v57 = vand.u32 4294901760, %v85_v0  ;;  %v3523_v23 = vand.u32 4294901760, %v1254_v3  ;;  %v1401_v38 = vsub.f32 %v3498_v49, %v4032_v12 }
  0x1f   :  { %4147 = vst [vmem:[#allocation9_spill] sm:$0xff] %v3518_v35  ;;  %2693 = vmatprep.mubr.f32.mxu0 %v222_v6  ;;  %v232_v47 = vand.u32 4294901760, %v231_v24  ;;  %v4036_v59 = vand.u32 4294901760, %v3518_v35  ;;  %v88_v8 = vsel %vm62_vm0, %v54_v4, 0  ;;  %v241_v61 = vsub.f32 %v3506_v62, %v4033_v22  ;;  %v1224_v24 = vld [vmem:[%s4022_s3 + $0x48] sm:$0xff] }
  0x20   :  { %2863 = vmatprep.mubr.f32.mxu1 %v1392_v7  ;;  %v3540_v60 = vsub.f32 %v85_v0, %v3521_v57  ;;  %v3543_v53 = vsub.f32 %v1254_v3, %v3523_v23  ;;  %v3545_v6 = vand.u32 4294901760, %v88_v8  ;;  %v1402_v12 = vand.u32 4294901760, %v1401_v38  ;;  %v1225_v38 = vld [vmem:[%s4022_s3 + $0x50] sm:$0xff] }
  0x21   :  { %2694 = vmatmul.mubr.f32.gmra.mrb[4].mxu0 %v232_v47  ;;  %v1411_v4 = vsub.f32 %v3518_v35, %v4036_v59  ;;  %v1257_v7 = vsel %vm1231_vm1, %v1223_v10, 0  ;;  %v91_v0 = vsel %vm62_vm0, %v55_v45, 0  ;;  %v242_v22 = vand.u32 4294901760, %v241_v61  ;;  %v56_v47 = vld [vmem:[%s4021_s2 + $0x50] sm:$0xff] }
  0x22   :  { %4148 = vst [vmem:[#allocation10_spill] sm:$0xff] %v3540_v60  ;;  %4149 = vst [vmem:[#allocation11_spill] sm:$0xff] %v3543_v53  ;;  %v4042_v3 = vand.u32 4294901760, %v3540_v60  ;;  %v4043_v50 = vand.u32 4294901760, %v3543_v53  ;;  %v3558_v41 = vsub.f32 %v88_v8, %v3545_v6  ;;  %2864 = vmatmul.mubr.f32.gmra.mrb[4].mxu1 %v1402_v12  ;;  %v3566_v59 = vand.u32 4294901760, %v1257_v7 }
  0x23   :  { %v1412_v10 = vand.u32 4294901760, %v1411_v4  ;;  %v3568_v61 = vand.u32 4294901760, %v91_v0  ;;  %v1260_v45 = vsel %vm1231_vm1, %v1224_v24, 0  ;;  %2696 = vmatprep.mubr.f32.mxu0 %v242_v22  ;;  %v94_v22 = vsel %vm62_vm0, %v56_v47, 0 }
  0x24   :  { %4150 = vst [vmem:[#allocation12_spill] sm:$0xff] %v3558_v41  ;;  %v251_v8 = vsub.f32 %v3540_v60, %v4042_v3  ;;  %v1421_v28 = vsub.f32 %v3543_v53, %v4043_v50  ;;  %v4048_v40 = vand.u32 4294901760, %v3558_v41  ;;  %v3578_v29 = vand.u32 4294901760, %v1260_v45  ;;  %v57_v3 = vld [vmem:[%s4021_s2 + $0x58] sm:$0xff]  ;;  %v59_v60 = vld [vmem:[%s4021_s2 + $0x68] sm:$0xff] }
  0x25   :  { %2866 = vmatprep.mubr.f32.mxu1 %v1412_v10  ;;  %v3581_v12 = vsub.f32 %v1257_v7, %v3566_v59  ;;  %v3584_v4 = vsub.f32 %v91_v0, %v3568_v61  ;;  %v1263_v24 = vsel %vm1231_vm1, %v1225_v38, 0  ;;  %v1226_v50 = vld [vmem:[%s4022_s3 + $0x58] sm:$0xff]  ;;  %v3602_v16 = vand.u32 4294901760, %v94_v22 }
  0x26   :  { %4151 = vst [vmem:[#allocation13_spill] sm:$0xff] %v3578_v29  ;;  %v252_v17 = vand.u32 4294901760, %v251_v8  ;;  %v1422_v10 = vand.u32 4294901760, %v1421_v28  ;;  %v261_v7 = vsub.f32 %v3558_v41, %v4048_v40  ;;  %v3598_v0 = vsub.f32 %v1260_v45, %v3578_v29 }
  0x27   :  { %4152 = vst [vmem:[#allocation14_spill] sm:$0xff] %v3581_v12  ;;  %4153 = vst [vmem:[#allocation15_spill] sm:$0xff] %v3584_v4  ;;  %v4052_v47 = vand.u32 4294901760, %v3581_v12  ;;  %v4053_v38 = vand.u32 4294901760, %v3584_v4  ;;  %v3604_v56 = vand.u32 4294901760, %v1263_v24  ;;  %v97_v8 = vsel %vm62_vm0, %v57_v3, 0 }
  0x28   :  { %4154 = vst [vmem:[#allocation16_spill] sm:$0xff] %v3598_v0  ;;  %4155 = vst [vmem:[#allocation17_spill] sm:$0xff] %v3602_v16  ;;  %2697 = vmatmul.mubr.f32.gmra.mrb[6].mxu0 %v252_v17  ;;  %2867 = vmatmul.mubr.f32.gmra.mrb[6].mxu1 %v1422_v10  ;;  %v262_v48 = vand.u32 4294901760, %v261_v7  ;;  %v4054_v28 = vand.u32 4294901760, %v3598_v0  ;;  %v1266_v40 = vsel %vm1231_vm1, %v1226_v50, 0  ;;  %v3616_v41 = vsub.f32 %v94_v22, %v3602_v16  ;;  %v58_v22 = vld [vmem:[%s4021_s2 + $0x60] sm:$0xff] }
  0x29   :  { %4156 = vst [vmem:[#allocation18_spill] sm:$0xff] %v3604_v56  ;;  %v1431_v45 = vsub.f32 %v3581_v12, %v4052_v47  ;;  %v271_v15 = vsub.f32 %v3584_v4, %v4053_v38  ;;  %v3619_v17 = vsub.f32 %v1263_v24, %v3604_v56  ;;  %v3624_v50 = vand.u32 4294901760, %v97_v8 }
  0x2a   :  { %4157 = vst [vmem:[#allocation19_spill] sm:$0xff] %v3616_v41  ;;  %2699 = vmatprep.mubr.f32.mxu0 %v262_v48  ;;  %v1441_v3 = vsub.f32 %v3598_v0, %v4054_v28  ;;  %v3626_v10 = vand.u32 4294901760, %v1266_v40  ;;  %v4161_v7 = vmov 0.0   ;;  %v1227_v48 = vld [vmem:[%s4022_s3 + $0x60] sm:$0xff]  ;;  %v4065_v28 = vand.u32 4294901760, %v3616_v41 }
  0x2b   :  { %4158 = vst [vmem:[#allocation20_spill] sm:$0xff] %v3619_v17  ;;  %4159 = vst [vmem:[#allocation21_spill] sm:$0xff] %v3624_v50  ;;  %v2445_v47 = vsel %vm3320_vm7, 1.0, %v4161_v7  ;;  %v1432_v24 = vand.u32 4294901760, %v1431_v45  ;;  %v272_v38 = vand.u32 4294901760, %v271_v15  ;;  %v4066_v0 = vand.u32 4294901760, %v3619_v17 }
  0x2c   :  { %4160 = vst [vmem:[#allocation22_spill] sm:$0xff] %v3626_v10  ;;  %v1442_v4 = vand.u32 4294901760, %v1441_v3  ;;  %v3640_v12 = vsub.f32 %v97_v8, %v3624_v50  ;;  %v3643_v7 = vsub.f32 %v1266_v40, %v3626_v10  ;;  %v3645_v53 = vsub.f32 %v2445_v47, %v2445_v47 }
  0x2d   :  { %2869 = vmatprep.mubr.f32.mxu1 %v1432_v24  ;;  %2700 = vmatmul.mubr.f32.gmra.mrb[8].mxu0 %v272_v38  ;;  %v281_v15 = vsub.f32 %v3616_v41, %v4065_v28  ;;  %v1451_v8 = vsub.f32 %v3619_v17, %v4066_v0  ;;  %v100_v45 = vsel %vm62_vm0, %v58_v22, 0  ;;  %v1269_v40 = vsel %vm1231_vm1, %v1227_v48, 0  ;;  %v1228_v28 = vld [vmem:[%s4022_s3 + $0x68] sm:$0xff]  ;;  %v60_v22 = vld [vmem:[%s4021_s2 + $0x70] sm:$0xff]  ;;  %v4245_v25 = vld [vmem:[#allocation13_spill] sm:$0xff] }
  0x2e   :  { %4162 = vst [vmem:[#allocation23_spill] sm:$0xff] %v3640_v12  ;;  %4163 = vst [vmem:[#allocation24_spill] sm:$0xff] %v3643_v7  ;;  %2870 = vmatmul.mubr.f32.gmra.mrb[8].mxu1 %v1442_v4  ;;  %v3661_v24 = vand.u32 4294901760, %v3645_v53  ;;  %v3663_v38 = vand.u32 4294901760, %v100_v45  ;;  %v3671_v4 = vand.u32 4294901760, %v1269_v40  ;;  %v103_v47 = vsel %vm62_vm0, %v59_v60, 0 }
  0x2f   :  { %v282_v0 = vand.u32 4294901760, %v281_v15  ;;  %v1452_v48 = vand.u32 4294901760, %v1451_v8  ;;  %v4167_v3 = vand.u32 4294901760, %v3640_v12  ;;  %v4168_v41 = vand.u32 4294901760, %v3643_v7  ;;  %v4246_v31 = vld [vmem:[#allocation17_spill] sm:$0xff] }
  0x30   :  { %4164 = vst [vmem:[#allocation25_spill] sm:$0xff] %v3661_v24  ;;  %4165 = vst [vmem:[#allocation26_spill] sm:$0xff] %v3663_v38  ;;  %v1526_v62 = vsub.f32 %v3645_v53, %v3661_v24  ;;  %v3683_v49 = vsub.f32 %v100_v45, %v3663_v38  ;;  %v3686_v15 = vsub.f32 %v1269_v40, %v3671_v4  ;;  %v3688_v60 = vand.u32 4294901760, %v103_v47  ;;  %v61_v45 = vld [vmem:[%s4021_s2 + $0x78] sm:$0xff] }
  0x31   :  { %4166 = vst [vmem:[#allocation27_spill] sm:$0xff] %v3671_v4  ;;  %v291_v17 = vsub.f32 %v3640_v12, %v4167_v3  ;;  %v1461_v35 = vsub.f32 %v3643_v7, %v4168_v41  ;;  %2702 = vmatprep.mubr.f32.mxu0 %v282_v0  ;;  %2872 = vmatprep.mubr.f32.mxu1 %v1452_v48  ;;  %v1272_v8 = vsel %vm1231_vm1, %v1228_v28, 0  ;;  %v106_v3 = vsel %vm62_vm0, %v60_v22, 0  ;;  %v1229_v41 = vld [vmem:[%s4022_s3 + $0x70] sm:$0xff]  ;;  %v1230_v0 = vld [vmem:[%s4022_s3 + $0x78] sm:$0xff] }
  0x32   :  { %4169 = vst [vmem:[#allocation28_spill] sm:$0xff] %v3683_v49  ;;  %4170 = vst [vmem:[#allocation29_spill] sm:$0xff] %v3686_v15  ;;  %v1527_v24 = vand.u32 4294901760, %v1526_v62  ;;  %v4089_v7 = vand.u32 4294901760, %v3683_v49  ;;  %v4092_v28 = vand.u32 4294901760, %v3686_v15  ;;  %v3704_v22 = vsub.f32 %v103_v47, %v3688_v60 }
  0x33   :  { %4171 = vst [vmem:[#allocation30_spill] sm:$0xff] %v3688_v60  ;;  %v292_v40 = vand.u32 4294901760, %v291_v17  ;;  %v1462_v48 = vand.u32 4294901760, %v1461_v35  ;;  %v3706_v12 = vand.u32 4294901760, %v1272_v8  ;;  %v3708_v13 = vand.u32 4294901760, %v106_v3 }
  0x34   :  { %4172 = vst [vmem:[#allocation31_spill] sm:$0xff] %v3704_v22  ;;  %v301_v5 = vsub.f32 %v3683_v49, %v4089_v7  ;;  %v1275_v35 = vsel %vm1231_vm1, %v1229_v41, 0  ;;  %v109_v62 = vsel %vm62_vm0, %v61_v45, 0  ;;  %v1278_v17 = vsel %vm1231_vm1, %v1230_v0, 0  ;;  %2885 = vmatprep.subr.mxu1 %v1527_v24 }
  0x35   :  { %4173 = vst [vmem:[#allocation32_spill] sm:$0xff] %v3706_v12  ;;  %4174 = vst [vmem:[#allocation33_spill] sm:$0xff] %v3708_v13  ;;  %2703 = vmatmul.mubr.f32.gmra.mrb[10].mxu0 %v292_v40  ;;  %2873 = vmatmul.mubr.f32.gmra.mrb[10].mxu1 %v1462_v48  ;;  %v1471_v47 = vsub.f32 %v3686_v15, %v4092_v28  ;;  %v4097_v1 = vand.u32 4294901760, %v3704_v22  ;;  %v3721_v40 = vsub.f32 %v1272_v8, %v3706_v12 }
  0x36   :  { %v3724_v48 = vsub.f32 %v106_v3, %v3708_v13  ;;  %2886 = vmatpush3.msra.mxu1 %v1527_v24  ;;  %v302_v7 = vand.u32 4294901760, %v301_v5  ;;  %v3726_v41 = vand.u32 4294901760, %v1275_v35  ;;  %v3728_v45 = vand.u32 4294901760, %v109_v62 }
  0x37   :  { %4175 = vst [vmem:[#allocation34_spill] sm:$0xff] %v3721_v40  ;;  %v3730_v0 = vand.u32 4294901760, %v1278_v17  ;;  %v1472_v49 = vand.u32 4294901760, %v1471_v47  ;;  %v311_v28 = vsub.f32 %v3704_v22, %v4097_v1  ;;  %v4102_v15 = vand.u32 4294901760, %v3721_v40 }
  0x38   :  { %4176 = vst [vmem:[#allocation35_spill] sm:$0xff] %v3724_v48  ;;  %4177 = vst [vmem:[#allocation36_spill] sm:$0xff] %v3726_v41  ;;  %v4105_v8 = vand.u32 4294901760, %v3724_v48  ;;  %2705 = vmatprep.mubr.f32.mxu0 %v302_v7  ;;  %v3738_v3 = vsub.f32 %v1275_v35, %v3726_v41  ;;  %v3741_v5 = vsub.f32 %v109_v62, %v3728_v45 }
  0x39   :  { %4178 = vst [vmem:[#allocation37_spill] sm:$0xff] %v3728_v45  ;;  %4179 = vst [vmem:[#allocation38_spill] sm:$0xff] %v3730_v0  ;;  %v3744_v24 = vsub.f32 %v1278_v17, %v3730_v0  ;;  %v3039_v47 = vpack.c.bf16 %v3335_v32, %v3305_v21  ;;  %2875 = vmatprep.mubr.f32.mxu1 %v1472_v49  ;;  %v312_v26 = vand.u32 4294901760, %v311_v28  ;;  %v4180_v49 = vand.u32 4294901760, %v3305_v21 }
  0x3a   :  { %v1481_v1 = vsub.f32 %v3721_v40, %v4102_v15  ;;  %v321_v7 = vsub.f32 %v3724_v48, %v4105_v8  ;;  %v3063_v35 = vpack.c.bf16 %v3328_v30, %v3303_v20  ;;  %v4181_v28 = vand.u32 4294901760, %v3335_v32 }
  0x3b   :  { %3040 = vmatprep.subr.bf16.mxu0 %v3039_v47  ;;  %2706 = vmatmul.mubr.f32.gmra.mrb[12].mxu0 %v312_v26  ;;  %v4182_v8 = vand.u32 4294901760, %v3303_v20  ;;  %v4183_v48 = vand.u32 4294901760, %v3328_v30  ;;  %v4184_v17 = vand.u32 4294901760, %v3738_v3  ;;  %v4185_v21 = vand.u32 4294901760, %v3741_v5 }
  0x3c   :  { %v3763_v27 = vpack.c.bf16 %v4181_v28, %v4180_v49  ;;  %v1482_v15 = vand.u32 4294901760, %v1481_v1  ;;  %v322_v40 = vand.u32 4294901760, %v321_v7  ;;  %3064 = vmatprep.subr.bf16.mxu1 %v3063_v35  ;;  %v4186_v49 = vand.u32 4294901760, %v3744_v24  ;;  %v4197_v28 = vld [vmem:[#allocation10_spill] sm:$0xff] }
  0x3d   :  { %v3769_v62 = vpack.c.bf16 %v4183_v48, %v4182_v8  ;;  %v1491_v22 = vsub.f32 %v3738_v3, %v4184_v17  ;;  %v331_v32 = vsub.f32 %v3741_v5, %v4185_v21  ;;  %v4187_v30 = vmov 1.0|1.0   ;;  %v4192_v48 = vld [vmem:[#allocation5_spill] sm:$0xff]  ;;  %v4193_v8 = vld [vmem:[#allocation6_spill] sm:$0xff]  ;;  %v4198_v21 = vld [vmem:[#allocation11_spill] sm:$0xff] }
  0x3e   :  { %v1501_v26 = vsub.f32 %v3744_v24, %v4186_v49  ;;  %2876 = vmatmul.mubr.f32.gmra.mrb[12].mxu1 %v1482_v15  ;;  %2708 = vmatprep.mubr.f32.mxu0 %v322_v40  ;;  %v4191_v40 = vld [vmem:[#allocation4_spill] sm:$0xff]  ;;  %v4196_v17 = vld [vmem:[#allocation9_spill] sm:$0xff]  ;;  %v4200_v49 = vld [vmem:[#allocation14_spill] sm:$0xff] }
  0x3f   :  { %v1492_v1 = vand.u32 4294901760, %v1491_v22  ;;  %v332_v20 = vand.u32 4294901760, %v331_v32  ;;  %v4190_v22 = vld [vmem:[#allocation3_spill] sm:$0xff]  ;;  %v4199_v32 = vld [vmem:[#allocation12_spill] sm:$0xff] }
  0x40   :  { %v1502_v7 = vand.u32 4294901760, %v1501_v26  ;;  %v4201_v26 = vld [vmem:[#allocation15_spill] sm:$0xff]  ;;  %v4256_v15 = vld [vmem:[#allocation37_spill] sm:$0xff] }
  0x41   :  { %2878 = vmatprep.mubr.f32.mxu1 %v1492_v1  ;;  %2709 = vmatmul.mubr.f32.gmra.mrb[14].mxu0 %v332_v20  ;;  %v4202_v1 = vld [vmem:[#allocation16_spill] sm:$0xff]  ;;  %v4203_v20 = vld [vmem:[#allocation19_spill] sm:$0xff] }
  0x42   :  { %2879 = vmatmul.mubr.f32.gmra.mrb[14].mxu1 %v1502_v7  ;;  %2715 = vmatprep.mubr.f32.mxu0 %v3289_v9  ;;  %v4204_v7 = vld [vmem:[#allocation20_spill] sm:$0xff] }
  0x43   :  { %2887 = vmatprep.mubr.f32.mxu1 %v3301_v19 }
  0x45   :  { %2716 = vmatmul.mubr.f32.vlgmr.msra.gmra.mrb[0].mxu0 %v3340_v34 }
  0x46   :  { %2888 = vmatmul.mubr.f32.vlgmr.msra.gmra.mrb[0].mxu1 %v3354_v37  ;;  %2718 = vmatprep.mubr.f32.mxu0 %v3368_v43 }
  0x47   :  { %2890 = vmatprep.mubr.f32.mxu1 %v3370_v44  ;;  %3042 = vmatpush3.bf16.msra.mxu0 %v3039_v47  ;;  %v4194_v47 = vld [vmem:[#allocation7_spill] sm:$0xff] }
  0x48   :  { %3066 = vmatpush3.bf16.msra.mxu1 %v3063_v35  ;;  %3044 = vmatprep.subr.msk.bf16.mxu0 %vm3331_vm8, %v4187_v30  ;;  %v4195_v35 = vld [vmem:[#allocation8_spill] sm:$0xff] }
  0x49   :  { %2719 = vmatmul.mubr.f32.gmra.mrb[2].mxu0 %v3391_v54  ;;  %2915 = vmatprep.subr.mxu1 %v3645_v53 }
  0x4a   :  { %2891 = vmatmul.mubr.f32.gmra.mrb[2].mxu1 %v3425_v11  ;;  %2721 = vmatprep.mubr.f32.mxu0 %v3448_v39 }
  0x4b   :  { %2893 = vmatprep.mubr.f32.mxu1 %v3458_v58 }
  0x4c   :  { %2916 = vmatpush3.msra.mxu1 %v3645_v53  ;;  %v4188_v53 = vmov 1.0  }
  0x4d   :  { %2722 = vmatmul.mubr.f32.gmra.mrb[4].mxu0 %v3464_v2  ;;  %3068 = vmatprep.subr.msk.bf16.mxu1 %vm3315_vm6, %v4187_v30 }
  0x4e   :  { %2894 = vmatmul.mubr.f32.gmra.mrb[4].mxu1 %v3481_v14  ;;  %2724 = vmatprep.mubr.f32.mxu0 %v3490_v36 }
  0x4f   :  { %2896 = vmatprep.mubr.f32.mxu1 %v3500_v55 }
  0x51   :  { %2725 = vmatmul.mubr.f32.gmra.mrb[6].mxu0 %v3521_v57 }
  0x52   :  { %2897 = vmatmul.mubr.f32.gmra.mrb[6].mxu1 %v3523_v23  ;;  %2727 = vmatprep.mubr.f32.mxu0 %v3545_v6 }
  0x53   :  { %2899 = vmatprep.mubr.f32.mxu1 %v3566_v59 }
  0x55   :  { %2728 = vmatmul.mubr.f32.gmra.mrb[8].mxu0 %v3568_v61 }
  0x56   :  { %2900 = vmatmul.mubr.f32.gmra.mrb[8].mxu1 %v3578_v29  ;;  %2730 = vmatprep.mubr.f32.mxu0 %v3602_v16  ;;  %v4216_v16 = vand.u32 4294901760, %v3382_v51  ;;  %v4217_v29 = vand.u32 4294901760, %v3385_v52 }
  0x57   :  { %2902 = vmatprep.mubr.f32.mxu1 %v3604_v56  ;;  %v4215_v56 = vand.u32 4294901760, %v3373_v46 }
  0x59   :  { %2731 = vmatmul.mubr.f32.gmra.mrb[10].mxu0 %v3624_v50  ;;  %v4214_v50 = vand.u32 4294901760, %v3366_v42 }
  0x5a   :  { %2903 = vmatmul.mubr.f32.gmra.mrb[10].mxu1 %v3626_v10  ;;  %2733 = vmatprep.mubr.f32.mxu0 %v3663_v38  ;;  %v4212_v38 = vand.u32 4294901760, %v3299_v18  ;;  %v4213_v10 = vand.u32 4294901760, %v3338_v33 }
  0x5b   :  { %2905 = vmatprep.mubr.f32.mxu1 %v3671_v4  ;;  %v4211_v4 = vld [vmem:[#allocation35_spill] sm:$0xff] }
  0x5d   :  { %2734 = vmatmul.mubr.f32.gmra.mrb[12].mxu0 %v3688_v60  ;;  %v4210_v60 = vld [vmem:[#allocation34_spill] sm:$0xff] }
  0x5e   :  { %2906 = vmatmul.mubr.f32.gmra.mrb[12].mxu1 %v3706_v12  ;;  %2736 = vmatprep.mubr.f32.mxu0 %v3708_v13  ;;  %v4208_v13 = vld [vmem:[#allocation29_spill] sm:$0xff]  ;;  %v4209_v12 = vld [vmem:[#allocation31_spill] sm:$0xff] }
  0x5f   :  { %2908 = vmatprep.mubr.f32.mxu1 %v3726_v41  ;;  %v4207_v41 = vld [vmem:[#allocation28_spill] sm:$0xff] }
  0x61   :  { %2737 = vmatmul.mubr.f32.gmra.mrb[14].mxu0 %v3728_v45  ;;  %v4206_v45 = vld [vmem:[#allocation24_spill] sm:$0xff] }
  0x62   :  { %2909 = vmatmul.mubr.f32.gmra.mrb[14].mxu1 %v3730_v0  ;;  %2743 = vmatprep.mubr.f32.mxu0 %v3299_v18  ;;  %v4205_v0 = vld [vmem:[#allocation23_spill] sm:$0xff]  ;;  %v4218_v18 = vand.u32 4294901760, %v3409_v63 }
  0x63   :  { %2917 = vmatprep.mubr.f32.mxu1 %v3338_v33  ;;  %v4219_v33 = vld [vmem:[#allocation25_spill] sm:$0xff] }
  0x65   :  { %2744 = vmatmul.mubr.f32.vlgmr.msra.gmra.mrb[0].mxu0 %v3366_v42  ;;  %v4220_v42 = vand.u32 4294901760, %v4190_v22 }
  0x66   :  { %2918 = vmatmul.mubr.f32.vlgmr.msra.gmra.mrb[0].mxu1 %v3373_v46  ;;  %2746 = vmatprep.mubr.f32.mxu0 %v3382_v51  ;;  %v4221_v46 = vand.u32 4294901760, %v4191_v40  ;;  %v4224_v51 = vand.u32 4294901760, %v4194_v47 }
  0x67   :  { %2920 = vmatprep.mubr.f32.mxu1 %v3385_v52  ;;  %3046 = vmatpush3.bf16.msk.msra.mxu0 %vm3331_vm8, %v4187_v30  ;;  %v4225_v52 = vand.u32 4294901760, %v4195_v35 }
  0x68   :  { %3070 = vmatpush3.bf16.msk.msra.mxu1 %vm3315_vm6, %v4187_v30  ;;  %3048 = vmatprep.subr.bf16.mxu0 %v3763_v27 }
  0x69   :  { %2747 = vmatmul.mubr.f32.gmra.mrb[2].mxu0 %v3409_v63  ;;  %2945 = vmatprep.subr.msk.mxu1 %vm3320_vm7, %v4188_v53  ;;  %v4227_v63 = vand.u32 4294901760, %v4197_v28 }
  0x6a   :  { %2921 = vmatmul.mubr.f32.gmra.mrb[2].mxu1 %v4190_v22  ;;  %2749 = vmatprep.mubr.f32.mxu0 %v4191_v40  ;;  %v4233_v22 = vand.u32 4294901760, %v4203_v20  ;;  %v4234_v40 = vand.u32 4294901760, %v4204_v7 }
  0x6b   :  { %2923 = vmatprep.mubr.f32.mxu1 %v4192_v48 }
  0x6c   :  { %2946 = vmatpush3.msk.msra.mxu1 %vm3320_vm7, %v4188_v53 }
  0x6d   :  { %2750 = vmatmul.mubr.f32.gmra.mrb[4].mxu0 %v4193_v8  ;;  %3072 = vmatprep.subr.bf16.mxu1 %v3769_v62 }
  0x6e   :  { %2924 = vmatmul.mubr.f32.gmra.mrb[4].mxu1 %v4194_v47  ;;  %2752 = vmatprep.mubr.f32.mxu0 %v4195_v35  ;;  %v4237_v47 = vand.u32 4294901760, %v4207_v41  ;;  %v4238_v35 = vand.u32 4294901760, %v4208_v13 }
  0x6f   :  { %2926 = vmatprep.mubr.f32.mxu1 %v4196_v17 }
  0x71   :  { %2753 = vmatmul.mubr.f32.gmra.mrb[6].mxu0 %v4197_v28  ;;  %v4240_v28 = vand.u32 4294901760, %v4210_v60 }
  0x72   :  { %2927 = vmatmul.mubr.f32.gmra.mrb[6].mxu1 %v4198_v21  ;;  %2755 = vmatprep.mubr.f32.mxu0 %v4199_v32 }
  0x73   :  { %2929 = vmatprep.mubr.f32.mxu1 %v4200_v49 }
  0x75   :  { %2756 = vmatmul.mubr.f32.gmra.mrb[8].mxu0 %v4201_v26 }
  0x76   :  { %2930 = vmatmul.mubr.f32.gmra.mrb[8].mxu1 %v4202_v1  ;;  %2758 = vmatprep.mubr.f32.mxu0 %v4203_v20 }
  0x77   :  { %2932 = vmatprep.mubr.f32.mxu1 %v4204_v7 }
  0x79   :  { %2759 = vmatmul.mubr.f32.gmra.mrb[10].mxu0 %v4205_v0 }
  0x7a   :  { %2933 = vmatmul.mubr.f32.gmra.mrb[10].mxu1 %v4206_v45  ;;  %2761 = vmatprep.mubr.f32.mxu0 %v4207_v41  ;;  %v4244_v41 = vand.u32 4294901760, %v3744_v24 }
  0x7b   :  { %2935 = vmatprep.mubr.f32.mxu1 %v4208_v13  ;;  %v4247_v13 = vld [vmem:[#allocation18_spill] sm:$0xff] }
  0x7d   :  { %2762 = vmatmul.mubr.f32.gmra.mrb[12].mxu0 %v4209_v12 }
  0x7e   :  { %2936 = vmatmul.mubr.f32.gmra.mrb[12].mxu1 %v4210_v60  ;;  %2764 = vmatprep.mubr.f32.mxu0 %v4211_v4  ;;  %v4250_v60 = vld [vmem:[#allocation26_spill] sm:$0xff] }
  0x7f   :  { %2938 = vmatprep.mubr.f32.mxu1 %v3738_v3 }
  0x81   :  { %2765 = vmatmul.mubr.f32.gmra.mrb[14].mxu0 %v3741_v5 }
  0x82   :  { %2939 = vmatmul.mubr.f32.gmra.mrb[14].mxu1 %v3744_v24  ;;  %2771 = vmatprep.mubr.f32.mxu0 %v4212_v38  ;;  %v4231_v38 = vand.u32 4294901760, %v4201_v26  ;;  %v4253_v24 = vld [vmem:[#allocation32_spill] sm:$0xff] }
  0x83   :  { %2947 = vmatprep.mubr.f32.mxu1 %v4213_v10  ;;  %v4230_v10 = vand.u32 4294901760, %v4200_v49 }
  0x85   :  { %2772 = vmatmul.mubr.f32.vlgmr.msra.gmra.mrb[0].mxu0 %v4214_v50  ;;  %v4229_v50 = vand.u32 4294901760, %v4199_v32  ;;  %v4257_v32 = vld [vmem:[#allocation38_spill] sm:$0xff] }
  0x86   :  { %2948 = vmatmul.mubr.f32.vlgmr.msra.gmra.mrb[0].mxu1 %v4215_v56  ;;  %2774 = vmatprep.mubr.f32.mxu0 %v4216_v16  ;;  %v4226_v56 = vand.u32 4294901760, %v4196_v17  ;;  %v4228_v16 = vand.u32 4294901760, %v4198_v21  ;;  %v4239_v17 = vand.u32 4294901760, %v4209_v12  ;;  %v4241_v21 = vand.u32 4294901760, %v4211_v4  ;;  %v4248_v12 = vld [vmem:[#allocation21_spill] sm:$0xff]  ;;  %v4249_v4 = vld [vmem:[#allocation22_spill] sm:$0xff] }
  0x87   :  { %2950 = vmatprep.mubr.f32.mxu1 %v4217_v29  ;;  %3050 = vmatpush3.bf16.msra.mxu0 %v3763_v27  ;;  %v4222_v29 = vand.u32 4294901760, %v4192_v48  ;;  %v4223_v27 = vand.u32 4294901760, %v4193_v8  ;;  %v4235_v48 = vand.u32 4294901760, %v4205_v0  ;;  %v4236_v8 = vand.u32 4294901760, %v4206_v45 }
  0x88   :  { %3074 = vmatpush3.bf16.msra.mxu1 %v3769_v62  ;;  %3052 = vmatprep.subr.msk.bf16.mxu0 %vm3331_vm8, %v4187_v30  ;;  %v4232_v62 = vand.u32 4294901760, %v4202_v1  ;;  %v4242_v0 = vand.u32 4294901760, %v3738_v3  ;;  %v4243_v45 = vand.u32 4294901760, %v3741_v5  ;;  %v4251_v3 = vld [vmem:[#allocation27_spill] sm:$0xff]  ;;  %v4252_v5 = vld [vmem:[#allocation30_spill] sm:$0xff] }
  0x89   :  { %2775 = vmatmul.mubr.f32.gmra.mrb[2].mxu0 %v4218_v18  ;;  %2975 = vmatprep.subr.mxu1 %v4219_v33 }
  0x8a   :  { %2951 = vmatmul.mubr.f32.gmra.mrb[2].mxu1 %v4220_v42  ;;  %2777 = vmatprep.mubr.f32.mxu0 %v4221_v46 }
  0x8b   :  { %2953 = vmatprep.mubr.f32.mxu1 %v4222_v29 }
  0x8c   :  { %2976 = vmatpush3.msra.mxu1 %v4219_v33 }
  0x8d   :  { %2778 = vmatmul.mubr.f32.gmra.mrb[4].mxu0 %v4223_v27  ;;  %3076 = vmatprep.subr.msk.bf16.mxu1 %vm3315_vm6, %v4187_v30 }
  0x8e   :  { %2954 = vmatmul.mubr.f32.gmra.mrb[4].mxu1 %v4224_v51  ;;  %2780 = vmatprep.mubr.f32.mxu0 %v4225_v52 }
  0x8f   :  { %2956 = vmatprep.mubr.f32.mxu1 %v4226_v56 }
  0x91   :  { %2781 = vmatmul.mubr.f32.gmra.mrb[6].mxu0 %v4227_v63 }
  0x92   :  { %2957 = vmatmul.mubr.f32.gmra.mrb[6].mxu1 %v4228_v16  ;;  %2783 = vmatprep.mubr.f32.mxu0 %v4229_v50 }
  0x93   :  { %2959 = vmatprep.mubr.f32.mxu1 %v4230_v10 }
  0x95   :  { %2784 = vmatmul.mubr.f32.gmra.mrb[8].mxu0 %v4231_v38 }
  0x96   :  { %2960 = vmatmul.mubr.f32.gmra.mrb[8].mxu1 %v4232_v62  ;;  %2786 = vmatprep.mubr.f32.mxu0 %v4233_v22 }
  0x97   :  { %2962 = vmatprep.mubr.f32.mxu1 %v4234_v40 }
  0x99   :  { %2787 = vmatmul.mubr.f32.gmra.mrb[10].mxu0 %v4235_v48 }
  0x9a   :  { %2963 = vmatmul.mubr.f32.gmra.mrb[10].mxu1 %v4236_v8  ;;  %2789 = vmatprep.mubr.f32.mxu0 %v4237_v47 }
  0x9b   :  { %2965 = vmatprep.mubr.f32.mxu1 %v4238_v35 }
  0x9d   :  { %2790 = vmatmul.mubr.f32.gmra.mrb[12].mxu0 %v4239_v17 }
  0x9e   :  { %2966 = vmatmul.mubr.f32.gmra.mrb[12].mxu1 %v4240_v28  ;;  %2792 = vmatprep.mubr.f32.mxu0 %v4241_v21 }
  0x9f   :  { %2968 = vmatprep.mubr.f32.mxu1 %v4242_v0 }
  0xa1   :  { %2793 = vmatmul.mubr.f32.gmra.mrb[14].mxu0 %v4243_v45 }
  0xa2   :  { %2969 = vmatmul.mubr.f32.gmra.mrb[14].mxu1 %v4244_v41  ;;  %2799 = vmatprep.mubr.f32.mxu0 %v3289_v9 }
  0xa3   :  { %2977 = vmatprep.mubr.f32.mxu1 %v3301_v19 }
  0xa5   :  { %2800 = vmatmul.mubr.f32.vlgmr.msra.gmra.mrb[0].mxu0 %v3340_v34 }
  0xa6   :  { %2978 = vmatmul.mubr.f32.vlgmr.msra.gmra.mrb[0].mxu1 %v3354_v37  ;;  %2802 = vmatprep.mubr.f32.mxu0 %v3368_v43 }
  0xa7   :  { %2980 = vmatprep.mubr.f32.mxu1 %v3370_v44  ;;  %3054 = vmatpush3.bf16.msk.msra.mxu0 %vm3331_vm8, %v4187_v30 }
  0xa8   :  { %3078 = vmatpush3.bf16.msk.msra.mxu1 %vm3315_vm6, %v4187_v30  ;;  %v4254_v30 = vld [vmem:[#allocation33_spill] sm:$0xff] }
  0xa9   :  { %2803 = vmatmul.mubr.f32.gmra.mrb[2].mxu0 %v3391_v54  ;;  %3005 = vmatprep.subr.msk.mxu1 %vm3320_vm7, %v4188_v53 }
  0xaa   :  { %2981 = vmatmul.mubr.f32.gmra.mrb[2].mxu1 %v3425_v11  ;;  %2805 = vmatprep.mubr.f32.mxu0 %v3448_v39 }
  0xab   :  { %2983 = vmatprep.mubr.f32.mxu1 %v3458_v58 }
  0xac   :  { %3006 = vmatpush3.msk.msra.mxu1 %vm3320_vm7, %v4188_v53  ;;  %v4255_v53 = vld [vmem:[#allocation36_spill] sm:$0xff] }
  0xad   :  { %2806 = vmatmul.mubr.f32.gmra.mrb[4].mxu0 %v3464_v2 }
  0xae   :  { %2984 = vmatmul.mubr.f32.gmra.mrb[4].mxu1 %v3481_v14  ;;  %2808 = vmatprep.mubr.f32.mxu0 %v3490_v36 }
  0xaf   :  { %2986 = vmatprep.mubr.f32.mxu1 %v3500_v55 }
  0xb1   :  { %2809 = vmatmul.mubr.f32.gmra.mrb[6].mxu0 %v3521_v57 }
  0xb2   :  { %2987 = vmatmul.mubr.f32.gmra.mrb[6].mxu1 %v3523_v23  ;;  %2811 = vmatprep.mubr.f32.mxu0 %v3545_v6 }
  0xb3   :  { %2989 = vmatprep.mubr.f32.mxu1 %v3566_v59 }
  0xb5   :  { %2812 = vmatmul.mubr.f32.gmra.mrb[8].mxu0 %v3568_v61 }
  0xb6   :  { %2990 = vmatmul.mubr.f32.gmra.mrb[8].mxu1 %v4245_v25  ;;  %2814 = vmatprep.mubr.f32.mxu0 %v4246_v31 }
  0xb7   :  { %2992 = vmatprep.mubr.f32.mxu1 %v4247_v13 }
  0xb9   :  { %2815 = vmatmul.mubr.f32.gmra.mrb[10].mxu0 %v4248_v12 }
  0xba   :  { %2993 = vmatmul.mubr.f32.gmra.mrb[10].mxu1 %v4249_v4  ;;  %2817 = vmatprep.mubr.f32.mxu0 %v4250_v60 }
  0xbb   :  { %2995 = vmatprep.mubr.f32.mxu1 %v4251_v3 }
  0xbd   :  { %2818 = vmatmul.mubr.f32.gmra.mrb[12].mxu0 %v4252_v5 }
  0xbe   :  { %2996 = vmatmul.mubr.f32.gmra.mrb[12].mxu1 %v4253_v24  ;;  %2820 = vmatprep.mubr.f32.mxu0 %v4254_v30 }
  0xbf   :  { %2998 = vmatprep.mubr.f32.mxu1 %v4255_v53 }
  0xc1   :  { %2821 = vmatmul.mubr.f32.gmra.mrb[14].mxu0 %v4256_v15 }
  0xc2   :  { %2999 = vmatmul.mubr.f32.gmra.mrb[14].mxu1 %v4257_v32  ;;  %2827 = vmatprep.mubr.f32.mxu0 %v3289_v9 }
  0xc3   :  { %3007 = vmatprep.mubr.f32.mxu1 %v3301_v19 }
  0xc5   :  { %2828 = vmatmul.mubr.f32.vlgmr.msra.gmra.mrb[0].mxu0 %v3340_v34 }
  0xc6   :  { %3008 = vmatmul.mubr.f32.vlgmr.msra.gmra.mrb[0].mxu1 %v3354_v37  ;;  %2830 = vmatprep.mubr.f32.mxu0 %v3368_v43 }
  0xc7   :  { %3010 = vmatprep.mubr.f32.mxu1 %v3370_v44 }
  0xc9   :  { %2831 = vmatmul.mubr.f32.gmra.mrb[2].mxu0 %v3391_v54 }
  0xca   :  { %3011 = vmatmul.mubr.f32.gmra.mrb[2].mxu1 %v3425_v11  ;;  %2833 = vmatprep.mubr.f32.mxu0 %v3448_v39 }
  0xcb   :  { %3013 = vmatprep.mubr.f32.mxu1 %v3458_v58 }
  0xcd   :  { %2834 = vmatmul.mubr.f32.gmra.mrb[4].mxu0 %v3464_v2 }
  0xce   :  { %3014 = vmatmul.mubr.f32.gmra.mrb[4].mxu1 %v3481_v14  ;;  %2836 = vmatprep.mubr.f32.mxu0 %v3490_v36 }
  0xcf   :  { %3016 = vmatprep.mubr.f32.mxu1 %v3500_v55 }
  0xd1   :  { %2837 = vmatmul.mubr.f32.gmra.mrb[6].mxu0 %v3521_v57 }
  0xd2   :  { %3017 = vmatmul.mubr.f32.gmra.mrb[6].mxu1 %v3523_v23  ;;  %2839 = vmatprep.mubr.f32.mxu0 %v3545_v6 }
  0xd3   :  { %3019 = vmatprep.mubr.f32.mxu1 %v3566_v59 }
  0xd5   :  { %2840 = vmatmul.mubr.f32.gmra.mrb[8].mxu0 %v3568_v61 }
  0xd6   :  { %3020 = vmatmul.mubr.f32.gmra.mrb[8].mxu1 %v4245_v25  ;;  %2842 = vmatprep.mubr.f32.mxu0 %v4246_v31 }
  0xd7   :  { %3022 = vmatprep.mubr.f32.mxu1 %v4247_v13 }
  0xd9   :  { %2843 = vmatmul.mubr.f32.gmra.mrb[10].mxu0 %v4248_v12 }
  0xda   :  { %3023 = vmatmul.mubr.f32.gmra.mrb[10].mxu1 %v4249_v4  ;;  %2845 = vmatprep.mubr.f32.mxu0 %v4250_v60 }
  0xdb   :  { %3025 = vmatprep.mubr.f32.mxu1 %v4251_v3 }
  0xdd   :  { %2846 = vmatmul.mubr.f32.gmra.mrb[12].mxu0 %v4252_v5 }
  0xde   :  { %3026 = vmatmul.mubr.f32.gmra.mrb[12].mxu1 %v4253_v24  ;;  %2848 = vmatprep.mubr.f32.mxu0 %v4254_v30 }
  0xdf   :  { %3028 = vmatprep.mubr.f32.mxu1 %v4255_v53 }
  0xe1   :  { %2849 = vmatmul.mubr.f32.gmra.mrb[14].mxu0 %v4256_v15 }
  0xe2   :  { %3029 = vmatmul.mubr.f32.gmra.mrb[14].mxu1 %v4257_v32 }
 0x198   :  { %v2829_v9 = vpop.f32.mrb[0].mxu0 }
 0x199   :  { %v3009_v19 = vpop.f32.mrb[0].mxu1  ;;  %v1121_v34 = vpop.f32.mrb[1].mxu0 }
 0x19a   :  { %v2398_v37 = vmul.f32 %v3009_v19, %v2829_v9  ;;  %v2303_v43 = vpop.f32.mrb[1].mxu1 }
 0x19b   :  { %v2397_v44 = vmul.f32 %v2303_v43, %v1121_v34 }
 0x19c   :  { %v2832_v54 = vpop.f32.mrb[2].mxu0 }
 0x19d   :  { %v2413_v11 = vadd.f32 %v2398_v37, %v2397_v44  ;;  %v3012_v39 = vpop.f32.mrb[2].mxu1  ;;  %v1133_v57 = vpop.f32.mrb[3].mxu0 }
 0x19e   :  { %v2400_v58 = vmul.f32 %v3012_v39, %v2832_v54  ;;  %v2315_v2 = vpop.f32.mrb[3].mxu1 }
 0x19f   :  { %v2399_v14 = vmul.f32 %v2315_v2, %v1133_v57 }
 0x1a0   :  { %v2835_v36 = vpop.f32.mrb[4].mxu0 }
 0x1a1   :  { %v2414_v55 = vadd.f32 %v2413_v11, %v2399_v14  ;;  %v3015_v23 = vpop.f32.mrb[4].mxu1  ;;  %v1145_v59 = vpop.f32.mrb[5].mxu0 }
 0x1a2   :  { %v2402_v6 = vmul.f32 %v3015_v23, %v2835_v36  ;;  %v2327_v61 = vpop.f32.mrb[5].mxu1 }
 0x1a3   :  { %v2401_v49 = vmul.f32 %v2327_v61, %v1145_v59  ;;  %v2415_v26 = vadd.f32 %v2414_v55, %v2400_v58 }
 0x1a4   :  { %v2838_v1 = vpop.f32.mrb[6].mxu0 }
 0x1a5   :  { %v2416_v20 = vadd.f32 %v2415_v26, %v2401_v49  ;;  %v3018_v7 = vpop.f32.mrb[6].mxu1  ;;  %v1157_v18 = vpop.f32.mrb[7].mxu0 }
 0x1a6   :  { %v2404_v33 = vmul.f32 %v3018_v7, %v2838_v1  ;;  %v2339_v42 = vpop.f32.mrb[7].mxu1 }
 0x1a7   :  { %v2403_v46 = vmul.f32 %v2339_v42, %v1157_v18  ;;  %v2417_v29 = vadd.f32 %v2416_v20, %v2402_v6 }
 0x1a8   :  { %v2841_v27 = vpop.f32.mrb[8].mxu0 }
 0x1a9   :  { %v2418_v51 = vadd.f32 %v2417_v29, %v2403_v46  ;;  %v3021_v52 = vpop.f32.mrb[8].mxu1  ;;  %v1169_v56 = vpop.f32.mrb[9].mxu0 }
 0x1aa   :  { %v2406_v63 = vmul.f32 %v3021_v52, %v2841_v27  ;;  %v2351_v16 = vpop.f32.mrb[9].mxu1 }
 0x1ab   :  { %v2405_v50 = vmul.f32 %v2351_v16, %v1169_v56  ;;  %v2419_v10 = vadd.f32 %v2418_v51, %v2404_v33 }
 0x1ac   :  { %v2844_v38 = vpop.f32.mrb[10].mxu0 }
 0x1ad   :  { %v2420_v62 = vadd.f32 %v2419_v10, %v2405_v50  ;;  %v3024_v22 = vpop.f32.mrb[10].mxu1  ;;  %v1181_v40 = vpop.f32.mrb[11].mxu0 }
 0x1ae   :  { %v2408_v48 = vmul.f32 %v3024_v22, %v2844_v38  ;;  %v2363_v8 = vpop.f32.mrb[11].mxu1 }
 0x1af   :  { %v2407_v47 = vmul.f32 %v2363_v8, %v1181_v40  ;;  %v2421_v35 = vadd.f32 %v2420_v62, %v2406_v63 }
 0x1b0   :  { %v2847_v17 = vpop.f32.mrb[12].mxu0 }
 0x1b1   :  { %v2422_v28 = vadd.f32 %v2421_v35, %v2407_v47  ;;  %v3027_v21 = vpop.f32.mrb[12].mxu1  ;;  %v1193_v0 = vpop.f32.mrb[13].mxu0 }
 0x1b2   :  { %v2410_v45 = vmul.f32 %v3027_v21, %v2847_v17  ;;  %v2375_v41 = vpop.f32.mrb[13].mxu1 }
 0x1b3   :  { %v2409_v25 = vmul.f32 %v2375_v41, %v1193_v0  ;;  %v2423_v31 = vadd.f32 %v2422_v28, %v2408_v48 }
 0x1b4   :  { %v2850_v13 = vpop.f32.mrb[14].mxu0 }
 0x1b5   :  { %v2424_v12 = vadd.f32 %v2423_v31, %v2409_v25  ;;  %v3030_v4 = vpop.f32.mrb[14].mxu1  ;;  %v1205_v60 = vpop.f32.mrb[15].mxu0 }
 0x1b6   :  { %v2412_v3 = vmul.f32 %v3030_v4, %v2850_v13  ;;  %v2387_v5 = vpop.f32.mrb[15].mxu1 }
 0x1b7   :  { %v2411_v24 = vmul.f32 %v2387_v5, %v1205_v60  ;;  %v2425_v30 = vadd.f32 %v2424_v12, %v2410_v45 }
 0x1b9   :  { %v2426_v53 = vadd.f32 %v2425_v30, %v2411_v24 }
 0x1bb   :  { %v2427_v15 = vadd.f32 %v2426_v53, %v2412_v3 }
 0x1bd   :  { %v2428_v32 = vrot.slane %v2427_v15, 4 }
 0x1bf   :  { %v2429_v9 = vadd.f32 %v2428_v32, %v2427_v15 }
 0x1c1   :  { %v2430_v19 = vrot.slane %v2429_v9, 2 }
 0x1c3   :  { %v2431_v34 = vadd.f32 %v2430_v19, %v2429_v9 }
 0x1c5   :  { %v2432_v37 = vrot.slane %v2431_v34, 1 }
 0x1c7   :  { %v2433_v43 = vadd.f32 %v2432_v37, %v2431_v34 }
 0x1c9   :  { %2434 = vst [vmem:[%s4023_s4] sm:$0x1] %v2433_v43 }

</bundles_post_ra>
